<compile_context>
chip_gen: v7x
topology: tpu7x:2x2x1
jax: 0.10.0
libtpu: 0.0.40
codegen_flags: <defaults>
</compile_context>

<pallas_src>
import jax
import jax.numpy as jnp
from jax import lax
from jax.experimental import pallas as pl
from jax.experimental.pallas import tpu as pltpu


# ----------------------------------------------------------------------------
# Fused kernel: one block of Bt batch elements per grid step.
# ----------------------------------------------------------------------------
def _msa_kernel(x_ref, w1_ref, w2_ref, out_ref, attn_ref):
    # x_ref    : (Bt, S, d_in)
    # w1_ref   : (d_in, d_hidden)     -- torch w_1.weight transposed
    # w2_ref   : (n_head, d_hidden)   -- torch w_2.weight layout (as stored)
    # out_ref  : (Bt, n_head, d_in)
    # attn_ref : (Bt, n_head, S)      -- lane-dense (S on the lane axis)
    Bt, S, d_in = x_ref.shape
    n_head, d_hidden = w2_ref.shape

    x = x_ref[...]                                                  # (Bt, S, d_in)

    # ---- h = tanh(x @ w1) as one flat matmul: M = Bt*S fills the MXU. ----
    x2d = x.reshape(Bt * S, d_in)
    h = jnp.tanh(jnp.dot(x2d, w1_ref[...],
                         preferred_element_type=jnp.float32))       # (Bt*S, d_hidden) f32
    # Keep MXU operands in the input dtype (native bf16 path when x is bf16).
    h3 = h.astype(x.dtype).reshape(Bt, S, d_hidden)                 # (Bt, S, d_hidden)

    # ---- scores produced directly in (Bt, n_head, S) orientation so the ----
    # ---- softmax axis (S) is the lane axis and attn stores are lane-dense. --
    w2b = jnp.broadcast_to(w2_ref[...].astype(x.dtype),
                           (Bt, n_head, d_hidden))
    scores = lax.dot_general(
        w2b, h3,
        dimension_numbers=(((2,), (2,)), ((0,), (0,))),
        preferred_element_type=jnp.float32)                         # (Bt, n_head, S)

    # ---- softmax over the sequence axis (last axis == lanes). ----
    m = jnp.max(scores, axis=-1, keepdims=True)                     # (Bt, n_head, 1)
    e = jnp.exp(scores - m)
    denom = jnp.sum(e, axis=-1, keepdims=True)
    # EUP reciprocal; approx=False keeps full f32 accuracy (1e-5 check below).
    attn = e * pl.reciprocal(denom, approx=False)                   # (Bt, n_head, S)
    attn_ref[...] = attn.astype(attn_ref.dtype)

    # ---- output[b] = attn[b] @ x[b]: contract S, batched over Bt. ----
    # (No explicit transpose: dot_general feeds the MXU directly.)
    out = lax.dot_general(
        attn.astype(x.dtype), x,
        dimension_numbers=(((2,), (1,)), ((0,), (0,))),
        preferred_element_type=jnp.float32)                         # (Bt, n_head, d_in)
    out_ref[...] = out.astype(out_ref.dtype)


# ----------------------------------------------------------------------------
# Wrapper
# ----------------------------------------------------------------------------
_VMEM_BLOCK_BUDGET = 20 * 1024 * 1024   # working-set budget; v7x (64 MiB) safe


def _pick_block_batch(B, S, d_in, d_hidden, n_head, itemsize,
                      budget_bytes=_VMEM_BLOCK_BUDGET):
    """Largest Bt whose double-buffered blocks + f32 temporaries fit the budget."""
    per_b = 2 * S * d_in * itemsize          # x block (double-buffered)
    per_b += 2 * n_head * d_in * itemsize    # pooled-output block
    per_b += 2 * n_head * S * itemsize       # attn-output block
    per_b += S * d_hidden * 4                # tanh intermediate (f32)
    per_b += 3 * n_head * S * 4              # scores / softmax temporaries (f32)
    weights = 2 * (d_in * d_hidden + n_head * d_hidden) * itemsize
    avail = max(budget_bytes - weights, per_b)
    return int(max(1, min(avail // per_b, B)))


@jax.jit
def multi_head_self_attention(x, w1, w2):
    """x: (B, S, d_in); w1: (d_in, d_hidden) [= torch w_1.weight.T];
    w2: (n_head, d_hidden) [= torch w_2.weight].

    Returns (output, attn) matching the PyTorch module:
      output: (B, n_head, d_in), attn: (B, S, n_head).
    """
    B, S, d_in = x.shape
    d_hidden = w1.shape[1]
    n_head = w2.shape[0]
    itemsize = jnp.dtype(x.dtype).itemsize

    bt = _pick_block_batch(B, S, d_in, d_hidden, n_head, itemsize)
    grid = pl.cdiv(B, bt)
    b_pad = grid * bt
    if b_pad != B:
        # Zero-pad the batch: pad rows give tanh(0)@w2 = 0 -> benign uniform
        # softmax; they are independent of real rows and sliced off below.
        x_in = jnp.pad(x, ((0, b_pad - B), (0, 0), (0, 0)))
    else:
        x_in = x

    out_shapes = (
        jax.ShapeDtypeStruct((b_pad, n_head, d_in), x.dtype),
        jax.ShapeDtypeStruct((b_pad, n_head, S), x.dtype),   # lane-dense attn^T
    )

    output, attn_t = pl.pallas_call(
        _msa_kernel,
        out_shape=out_shapes,
        grid=(grid,),
        in_specs=[
            pl.BlockSpec((bt, S, d_in), lambda b: (b, 0, 0)),
            # Constant index maps -> weights DMA'd once, resident across grid.
            pl.BlockSpec((d_in, d_hidden), lambda b: (0, 0)),
            pl.BlockSpec((n_head, d_hidden), lambda b: (0, 0)),
        ],
        out_specs=(
            pl.BlockSpec((bt, n_head, d_in), lambda b: (b, 0, 0)),
            pl.BlockSpec((bt, n_head, S), lambda b: (b, 0, 0)),
        ),
        compiler_params=pltpu.CompilerParams(
            dimension_semantics=("parallel",),
            vmem_limit_bytes=32 * 1024 * 1024,
        ),
    )(x_in, w1, w2)

    output = output[:B]
    # attn was stored transposed for lane-dense stores; restore torch layout.
    attn = jnp.transpose(attn_t[:B], (0, 2, 1))                     # (B, S, n_head)
    return output, attn


# ----------------------------------------------------------------------------
# Pure-JAX reference for verification
# ----------------------------------------------------------------------------
def reference_msa(x, w1, w2):
    attn = jnp.tanh(x @ w1) @ w2.T                     # (B, S, n_head)
    attn = jax.nn.softmax(attn, axis=1)                # softmax over sequence
    output = jnp.einsum("bsh,bsd->bhd", attn, x)       # (B, n_head, d_in)
    return output, attn


def xavier_uniform(key, fan_in, fan_out, shape, dtype=jnp.float32):
    limit = jnp.sqrt(6.0 / (fan_in + fan_out))
    return jax.random.uniform(key, shape, dtype, -limit, limit)


if __name__ == "__main__":
    B, S = 2, 16
    d_in, d_hidden, n_head = 32, 24, 4

    key = jax.random.PRNGKey(0)
    kx, k1, k2 = jax.random.split(key, 3)
    x = jax.random.normal(kx, (B, S, d_in), jnp.float32)
    # w1 stored as (d_in, d_hidden)  (= torch w_1.weight.T, so kernel does x @ w1)
    # w2 stored as (n_head, d_hidden) (= torch w_2.weight layout, used as-is)
    w1 = xavier_uniform(k1, d_in, d_hidden, (d_in, d_hidden))
    w2 = xavier_uniform(k2, d_hidden, n_head, (n_head, d_hidden))

    output, attn = multi_head_self_attention(x, w1, w2)
    output = jax.block_until_ready(output)
    attn = jax.block_until_ready(attn)

    ref_out, ref_attn = reference_msa(x, w1, w2)
    assert output.shape == (B, n_head, d_in)
    assert attn.shape == (B, S, n_head)
    assert jnp.allclose(output, ref_out, atol=1e-5, rtol=1e-5), "output mismatch"
    assert jnp.allclose(attn, ref_attn, atol=1e-5, rtol=1e-5), "attn mismatch"

    print("KERNEL_OK")
</pallas_src>

<mosaic_0001>
module attributes {stable_mosaic.version = 11 : i64} {
  func.func @_msa_kernel(%arg0: i32, %arg1: memref<2x16x32xf32, #tpu.memory_space<vmem>>, %arg2: memref<32x24xf32, #tpu.memory_space<vmem>>, %arg3: memref<4x24xf32, #tpu.memory_space<vmem>>, %arg4: memref<2x4x32xf32, #tpu.memory_space<vmem>>, %arg5: memref<2x4x16xf32, #tpu.memory_space<vmem>>) attributes {dimension_semantics = [#tpu.dimension_semantics<parallel>], iteration_bounds = array<i64: 1>, scalar_prefetch = 0 : i64, scratch_operands = 0 : i64, tpu.core_type = #tpu.core_type<tc>, window_params = [{transform_indices = @transform_0, window_bounds = array<i64: 2, 16, 32>}, {pipeline_mode = #tpu.pipeline_mode<synchronous>, transform_indices = @transform_1, window_bounds = array<i64: 32, 24>}, {pipeline_mode = #tpu.pipeline_mode<synchronous>, transform_indices = @transform_2, window_bounds = array<i64: 4, 24>}, {transform_indices = @transform_3, window_bounds = array<i64: 2, 4, 32>}, {transform_indices = @transform_4, window_bounds = array<i64: 2, 4, 16>}]} {
    %c0 = arith.constant 0 : index
    %c0_0 = arith.constant 0 : index
    %c0_1 = arith.constant 0 : index
    %0 = vector.load %arg1[%c0, %c0_0, %c0_1] : memref<2x16x32xf32, #tpu.memory_space<vmem>>, vector<2x16x32xf32>
    %1 = vector.shape_cast %0 : vector<2x16x32xf32> to vector<32x32xf32>
    %c0_2 = arith.constant 0 : index
    %c0_3 = arith.constant 0 : index
    %2 = vector.load %arg2[%c0_2, %c0_3] : memref<32x24xf32, #tpu.memory_space<vmem>>, vector<32x24xf32>
    %cst = arith.constant dense<0.000000e+00> : vector<32x24xf32>
    %3 = tpu.matmul %1, %2, %cst {dimension_numbers = #tpu.dot_dimension_numbers<[1], [0], [0], [1], [0, 0, 1, 1], [], []>} : vector<32x32xf32>, vector<32x24xf32>, vector<32x24xf32> -> vector<32x24xf32>
    %4 = math.tanh %3 : vector<32x24xf32>
    %5 = vector.shape_cast %4 : vector<32x24xf32> to vector<2x16x24xf32>
    %c0_4 = arith.constant 0 : index
    %c0_5 = arith.constant 0 : index
    %6 = vector.load %arg3[%c0_4, %c0_5] : memref<4x24xf32, #tpu.memory_space<vmem>>, vector<4x24xf32>
    %7 = vector.shape_cast %6 : vector<4x24xf32> to vector<1x4x24xf32>
    %8 = vector.broadcast %7 : vector<1x4x24xf32> to vector<2x4x24xf32>
    %cst_6 = arith.constant dense<0.000000e+00> : vector<2x4x16xf32>
    %9 = tpu.matmul %8, %5, %cst_6 {dimension_numbers = #tpu.dot_dimension_numbers<[2], [2], [1], [1], [0, 0, 0, 1, 1, 1], [0], [0]>} : vector<2x4x24xf32>, vector<2x16x24xf32>, vector<2x4x16xf32> -> vector<2x4x16xf32>
    %cst_7 = arith.constant dense<0xFF800000> : vector<2x4xf32>
    %10 = vector.multi_reduction <maximumf>, %9, %cst_7 [2] : vector<2x4x16xf32> to vector<2x4xf32>
    %11 = vector.shape_cast %10 : vector<2x4xf32> to vector<2x4x1xf32>
    %12 = vector.broadcast %11 : vector<2x4x1xf32> to vector<2x4x16xf32>
    %13 = arith.subf %9, %12 : vector<2x4x16xf32>
    %14 = math.exp %13 : vector<2x4x16xf32>
    %cst_8 = arith.constant dense<0.000000e+00> : vector<2x4xf32>
    %15 = vector.multi_reduction <add>, %14, %cst_8 [2] : vector<2x4x16xf32> to vector<2x4xf32>
    %16 = vector.shape_cast %15 : vector<2x4xf32> to vector<2x4x1xf32>
    %17 = tpu.reciprocal %16 : vector<2x4x1xf32> -> vector<2x4x1xf32>
    %18 = vector.broadcast %17 : vector<2x4x1xf32> to vector<2x4x16xf32>
    %19 = arith.mulf %14, %18 : vector<2x4x16xf32>
    %c0_9 = arith.constant 0 : index
    %c0_10 = arith.constant 0 : index
    %c0_11 = arith.constant 0 : index
    %20 = vector.load %arg5[%c0_9, %c0_10, %c0_11] : memref<2x4x16xf32, #tpu.memory_space<vmem>>, vector<2x4x16xf32>
    tpu.vector_store %arg5[%c0_9, %c0_10, %c0_11], %19 {strides = array<i32>} : memref<2x4x16xf32, #tpu.memory_space<vmem>>, vector<2x4x16xf32>,
    %cst_12 = arith.constant dense<0.000000e+00> : vector<2x4x32xf32>
    %21 = tpu.matmul %19, %0, %cst_12 {dimension_numbers = #tpu.dot_dimension_numbers<[2], [1], [1], [2], [0, 0, 0, 1, 1, 2], [0], [0]>} : vector<2x4x16xf32>, vector<2x16x32xf32>, vector<2x4x32xf32> -> vector<2x4x32xf32>
    %c0_13 = arith.constant 0 : index
    %c0_14 = arith.constant 0 : index
    %c0_15 = arith.constant 0 : index
    %22 = vector.load %arg4[%c0_13, %c0_14, %c0_15] : memref<2x4x32xf32, #tpu.memory_space<vmem>>, vector<2x4x32xf32>
    tpu.vector_store %arg4[%c0_13, %c0_14, %c0_15], %21 {strides = array<i32>} : memref<2x4x32xf32, #tpu.memory_space<vmem>>, vector<2x4x32xf32>,
    return
  }
  func.func @transform_0(%arg0: i32) -> (i32, i32, i32) {
    %c0_i32 = arith.constant 0 : i32
    %c0_i32_0 = arith.constant 0 : i32
    %c0_i32_1 = arith.constant 0 : i32
    return %arg0, %c0_i32, %c0_i32_0 : i32, i32, i32
  }
  func.func @transform_1(%arg0: i32) -> (i32, i32) {
    %c0_i32 = arith.constant 0 : i32
    %c0_i32_0 = arith.constant 0 : i32
    %c0_i32_1 = arith.constant 0 : i32
    return %c0_i32, %c0_i32_0 : i32, i32
  }
  func.func @transform_2(%arg0: i32) -> (i32, i32) {
    %c0_i32 = arith.constant 0 : i32
    %c0_i32_0 = arith.constant 0 : i32
    %c0_i32_1 = arith.constant 0 : i32
    return %c0_i32, %c0_i32_0 : i32, i32
  }
  func.func @transform_3(%arg0: i32) -> (i32, i32, i32) {
    %c0_i32 = arith.constant 0 : i32
    %c0_i32_0 = arith.constant 0 : i32
    %c0_i32_1 = arith.constant 0 : i32
    return %arg0, %c0_i32, %c0_i32_0 : i32, i32, i32
  }
  func.func @transform_4(%arg0: i32) -> (i32, i32, i32) {
    %c0_i32 = arith.constant 0 : i32
    %c0_i32_0 = arith.constant 0 : i32
    %c0_i32_1 = arith.constant 0 : i32
    return %arg0, %c0_i32, %c0_i32_0 : i32, i32, i32
  }
}

</mosaic_0001>

<bundles_post_ra>
// kernel: multi_head_self_attention.1
= control target key start
LH: loop header
LB: loop body
LE: loop exit
PB: predicated region body
PF: predicated region fallthrough
CT: control target
= control target key end

     0   :  { %10 = vsyncpa [#allocation3], 0  ;;  %vm26_vm0 = vcmask 261120   ;;  %s771_s0 = inlined_call_operand.vmem [shape: f32[2,16,32], index: 0, kind: input, shape index: {}]   ;;  %s772_s1 = inlined_call_operand.vmem [shape: f32[32,24], index: 1, kind: input, shape index: {}]   ;;  %s773_s2 = inlined_call_operand.vmem [shape: f32[4,24], index: 2, kind: input, shape index: {}]   ;;  %s774_s3 = inlined_call_operand.hbm [shape: f32[2,4,32], index: 3, kind: output, shape index: {0}]   ;;  %s775_s4 = inlined_call_operand.hbm [shape: f32[2,4,16], index: 4, kind: output, shape index: {1}]  }
   0x1   :  { %v22_v0 = vld [vmem:[%s772_s1] sm:$0xff]  ;;  %v23_v1 = vld [vmem:[%s772_s1 + $0x8] sm:$0xff]  ;;  %v24_v2 = vld [vmem:[%s772_s1 + $0x10] sm:$0xff] }
   0x2   :  { %v566_v3 = vpack.c.bf16 %v23_v1, %v22_v0  ;;  %v25_v4 = vld [vmem:[%s772_s1 + $0x18] sm:$0xff]  ;;  %v18_v5 = vld [vmem:[%s771_s0] sm:$0xff]  ;;  %v19_v6 = vld [vmem:[%s771_s0 + $0x8] sm:$0xff] }
   0x3   :  { %v570_v7 = vpack.c.bf16 %v25_v4, %v24_v2  ;;  %532 = vmatprep.mubr.msk.f32.mxu0 %vm26_vm0, %v18_v5  ;;  %v583_v8 = vpack.c.bf16 %v19_v6, %v18_v5  ;;  %v713_v9 = vld [vmem:[%s771_s0 + $0x10] sm:$0xff]  ;;  %v718_v10 = vld [vmem:[%s771_s0 + $0x18] sm:$0xff] }
   0x4   :  { %11 = vsyncpa [#allocation5], 0  ;;  %567 = vmatprep.subr.bf16.mxu0 %v566_v3  ;;  %v586_v11 = vpack.c.bf16 %v718_v10, %v713_v9  ;;  %v659_v12 = vmov 0.0|0.0   ;;  %vm660_vm1 = vmmov 0   ;;  %v661_v13 = vmov 0.0  }
   0x5   :  { %569 = vmatpush3.bf16.msra.mxu0 %v566_v3  ;;  %574 = vmatprep.subr.bf16.mxu1 %v659_v12  ;;  %vm129_vm2 = vcmask 195584   ;;  %v128_v24 = vld [vmem:[%s773_s2] sm:$0xf]  ;;  %vm285_vm4 = vcmask 125952   ;;  %vm310_vm5 = vcmask 130048   ;;  %s662_s2 = smov [#allocation4]  }
   0x6   :  { %571 = vmatprep.subr.bf16.mxu0 %v570_v7  ;;  %542 = vmatprep.mubr.msk.f32.mxu1 %vm660_vm1, %v661_v13  ;;  %vm576_vm3 = vmpackc.low %vm129_vm2, %vm129_vm2  ;;  %s477_s5 = sshll.u32 %s662_s2, 4  ;;  %s478_s5 = int_to_ptr.vmem [resolvable:$true] %s477_s5 }
   0x7   :  { %s611_s6 = scalar_lea.vmem %s478_s5, 128  ;;  %p616_p1 = scmp.lt.s32.totalorder %s478_s5, %s478_s5 }
   0x8   :  { %p612_p0 = scmp.ne.s32.totalorder %s478_s5, %s611_s6  ;;  %p617_p2 = scmp.lt.s32.totalorder %s611_s6, %s611_s6 }
   0x9   :  { %573 = vmatpush3.bf16.msra.mxu0 %v570_v7 }
   0xa   :  { %578 = vmatprep.subr.bf16.mxu0 %v659_v12  ;;  %p618_p3 = por %p617_p2, %p616_p1 }
   0xc   :  { %533 = vmatmul.mubr.msk.f32.vlgmr.msra.gmra.mrb[0].mxu0 %vm26_vm0, %v19_v6  ;;  %p619_p4 = pnand %p618_p3, %p612_p0 }
   0xd   :  { %535 = vmatprep.mubr.msk.f32.mxu0 %vm26_vm0, %v713_v9 }
  0x10   :  { %536 = vmatmul.mubr.msk.f32.gmra.mrb[2].mxu0 %vm26_vm0, %v718_v10 }
  0x11   :  { %549 = vmatprep.mubr.msk.f32.mxu0 %vm660_vm1, %v661_v13 }
  0xdf   :  { %v534_v14 = vpop.f32.mrb[0].mxu0 }
  0xe0   :  { %595 = vtanh.f32 %v534_v14  ;;  %v105_v15 = vpop.f32.mrb[1].mxu0 }
  0xe1   :  { %597 = vtanh.f32 %v105_v15 }
  0xe3   :  { %v537_v16 = vpop.f32.mrb[2].mxu0 }
  0xe4   :  { %599 = vtanh.f32 %v537_v16  ;;  %v115_v17 = vpop.f32.mrb[3].mxu0 }
  0xe5   :  { %601 = vtanh.f32 %v115_v17 }
  0xea   :  { %v596_v18 = vpop.eup %595 }
  0xeb   :  { %v598_v19 = vpop.eup %597 }
  0xec   :  { %v575_v20 = vpack.c.bf16 %v596_v18, %v598_v19 }
  0xee   :  { %v600_v21 = vpop.eup %599  ;;  %577 = vmatpush3.bf16.xpose.msk.msra.mxu1 %vm576_vm3, %v575_v20 }
  0xef   :  { %v602_v22 = vpop.eup %601  ;;  %582 = vmatprep.subr.bf16.mxu1 %v659_v12 }
  0xf0   :  { %v579_v23 = vpack.c.bf16 %v600_v21, %v602_v22 }
  0xf2   :  { %581 = vmatpush3.bf16.xpose.msk.msra.mxu0 %vm576_vm3, %v579_v23 }
  0xf5   :  { %543 = vmatmul.mubr.msk.f32.vlgmr.msra.gmra.mrb[0].mxu1 %vm129_vm2, %v128_v24 }
  0xf6   :  { %584 = vmatpush3.bf16.msra.mxu1 %v583_v8  ;;  %556 = vmatprep.mubr.msk.f32.mxu1 %vm660_vm1, %v661_v13 }
  0xf7   :  { %585 = vmatprep.subr.bf16.mxu1 %v659_v12 }
  0xf9   :  { %550 = vmatmul.mubr.msk.f32.vlgmr.msra.gmra.mrb[4].mxu0 %vm129_vm2, %v128_v24 }
 0x1c8   :  { %v205_v25 = vpop.f32.mrb[0].mxu1 }
 0x1c9   :  { %v544_v26 = vpop.f32.mrb[1].mxu1  ;;  %v286_v27 = vsel %vm285_vm4, %v205_v25, -inf }
 0x1ca   :  { %287 = vmax.xlane.f32.xlu0 %v286_v27 }
 0x1cc   :  { %v281_v28 = vpop.f32.mrb[4].mxu0 }
 0x1cd   :  { %v551_v29 = vpop.f32.mrb[5].mxu0  ;;  %v289_v30 = vsel %vm285_vm4, %v281_v28, -inf }
 0x1ce   :  { %290 = vmax.xlane.f32.xlu0 %v289_v30 }
 0x257   :  { %v288_v31 = vpop.xlane.xlu0 %287 }
 0x258   :  { %v292_v32 = vsub.f32 %v205_v25, %v288_v31 }
 0x25a   :  { %v294_v33 = vmul.f32 1.442695, %v292_v32 }
 0x25b   :  { %v291_v34 = vpop.xlane.xlu0 %290 }
 0x25c   :  { %603 = vpow2.f32 %v294_v33  ;;  %v293_v35 = vsub.f32 %v281_v28, %v291_v34 }
 0x25e   :  { %v296_v36 = vmul.f32 1.442695, %v293_v35 }
 0x260   :  { %605 = vpow2.f32 %v296_v36 }
 0x266   :  { %v604_v37 = vpop.eup %603 }
 0x267   :  { %v298_v38 = vsel %vm285_vm4, %v604_v37, 0.0 }
 0x268   :  { %299 = vadd.xlane.f32.xlu1 %v298_v38 }
 0x26a   :  { %v606_v39 = vpop.eup %605 }
 0x26b   :  { %v301_v40 = vsel %vm285_vm4, %v606_v39, 0.0 }
 0x26c   :  { %302 = vadd.xlane.f32.xlu1 %v301_v40 }
 0x2f5   :  { %v300_v41 = vpop.xlane.xlu1 %299 }
 0x2f6   :  { %607 = vrcp.f32 %v300_v41 }
 0x2f9   :  { %v303_v42 = vpop.xlane.xlu1 %302 }
 0x2fa   :  { %609 = vrcp.f32 %v303_v42 }
 0x300   :  { %v608_v43 = vpop.eup %607 }
 0x301   :  { %v306_v44 = vmul.f32 %v608_v43, %v604_v37 }
 0x303   :  { %308 = vst.msk [vmem:[#allocation4] sm:$0xf] %vm285_vm4, %v306_v44  ;;  %557 = vmatmul.mubr.msk.f32.vlgmr.msra.gmra.mrb[2].mxu1 %vm310_vm5, %v306_v44 }
 0x304   :  { %v610_v45 = vpop.eup %609  ;;  %587 = vmatpush3.bf16.msra.mxu1 %v586_v11  ;;  %563 = vmatprep.mubr.msk.f32.mxu1 %vm660_vm1, %v661_v13 }
 0x305   :  { %v307_v46 = vmul.f32 %v610_v45, %v606_v39 }
 0x307   :  { %309 = vst.msk [vmem:[#allocation4 + $0x4] sm:$0xf] %vm285_vm4, %v307_v46  ;;  %564 = vmatmul.mubr.msk.f32.vlgmr.msra.gmra.mrb[4].mxu1 %vm310_vm5, %v307_v46 }
 0x308   :  { %622 = shalt.err (!%p619_p4)
}
 0x309   :  { %s623_s9 = scalar_lea.hbm %s775_s4, 128 }
 0x30a   :  { %p624_p5 = scmp.ne.s32.totalorder %s775_s4, %s623_s9  ;;  %p627_p6 = scmp.lt.u32.totalorder %s623_s9, %s775_s4 }
 0x30c   :  { %p629_p7 = pnand %p627_p6, %p624_p5 }
 0x30e   :  { %632 = shalt.err (!%p629_p7)
}
 0x30f   :  { %s663_s14 = smov 64   ;;  %s664_s15 = smov 4   ;;  %vm457_vm6 = vcmask 257024  }
 0x310   :  { %483 = dma.vmem_to_hbm [thread:$0]  %s478_s5, 128, %s775_s4, [#allocation5], %s663_s14, %s663_s14, %s664_s15  }
 0x311   :  { %s665_s18 = smov [#allocation2]  }
 0x312   :  { %s465_s19 = sshll.u32 %s665_s18, 4  ;;  %s466_s19 = int_to_ptr.vmem [resolvable:$true] %s465_s19 }
 0x313   :  { %s633_s20 = scalar_lea.vmem %s466_s19, 128  ;;  %p638_p9 = scmp.lt.s32.totalorder %s466_s19, %s466_s19 }
 0x314   :  { %p634_p8 = scmp.ne.s32.totalorder %s466_s19, %s633_s20  ;;  %p639_p10 = scmp.lt.s32.totalorder %s633_s20, %s633_s20 }
 0x316   :  { %p640_p11 = por %p639_p10, %p638_p9 }
 0x318   :  { %p641_p12 = pnand %p640_p11, %p634_p8 }
 0x3d6   :  { %v380_v47 = vpop.f32.mrb[2].mxu1 }
 0x3d7   :  { %458 = vst.msk [vmem:[#allocation2] sm:$0xf] %vm457_vm6, %v380_v47  ;;  %v558_v48 = vpop.f32.mrb[3].mxu1 }
 0x3da   :  { %v453_v49 = vpop.f32.mrb[4].mxu1 }
 0x3db   :  { %459 = vst.msk [vmem:[#allocation2 + $0x4] sm:$0xf] %vm457_vm6, %v453_v49  ;;  %v565_v50 = vpop.f32.mrb[5].mxu1 }
 0x3dc   :  { %644 = shalt.err (!%p641_p12)
}
 0x3dd   :  { %s645_s4 = scalar_lea.hbm %s774_s3, 128 }
 0x3de   :  { %p646_p13 = scmp.ne.s32.totalorder %s774_s3, %s645_s4  ;;  %p649_p0 = scmp.lt.u32.totalorder %s645_s4, %s774_s3 }
 0x3e0   :  { %p651_p1 = pnand %p649_p0, %p646_p13 }
 0x3e2   :  { %654 = shalt.err (!%p651_p1)
}
 0x3e3   :  { %471 = dma.vmem_to_hbm [thread:$0]  %s466_s19, 128, %s774_s3, [#allocation3], %s663_s14, %s663_s14, %s664_s15  }
 0x3e4   :  { %655 = dma.done.wait [#allocation3], 128  }
 0x3e5   :  { %656 = vsyncadd [#allocation3], 4294967168 }
 0x3e6   :  { %657 = dma.done.wait [#allocation5], 128  }
 0x3e7   :  { %658 = vsyncadd [#allocation5], 4294967168 }
 0x3e8   :  { %490 = vsyncpa [#allocation3], 1 }
 0x3e9   :  { %491 = vsyncpa [#allocation5], 1 }

</bundles_post_ra>
